<compile_context>
chip_gen: v5e
topology: v5e:2x2
jax: 0.10.0
libtpu: 0.0.40
codegen_flags: <defaults>
</compile_context>

<pallas_src>
from functools import partial

import jax
import jax.numpy as jnp
from jax.experimental import pallas as pl
from jax.experimental.pallas import tpu as pltpu

_LANES = 128
_SUBLANES = 8


def _sigmoid(x):
    # sigmoid(x) == 0.5 * tanh(0.5 * x) + 0.5  -> a single EUP tanh per activation.
    return 0.5 * jnp.tanh(0.5 * x) + 0.5


def _net_kernel(params_ref, x_ref, o_ref, *, input_dim, hidden, output_dim):
    """params_ref: SMEM f32[D*H + H + H*O + O]   (w1 | b1 | w2 | b2)
    x_ref:     VMEM f32[D, tile_rows, 128]     (batch on sublanes x lanes)
    o_ref:     VMEM f32[O, tile_rows, 128]
    """
    D, H, O = input_dim, hidden, output_dim
    w1_off = 0            # w1 stored as (D, H) row-major
    b1_off = D * H        # b1: (H,)
    w2_off = b1_off + H   # w2 stored as (H, O) row-major
    b2_off = w2_off + H * O

    # Hoist all 9 scalar parameter reads (SMEM scalar loads) to the top.
    w1 = [[params_ref[w1_off + i * H + j] for i in range(D)] for j in range(H)]
    b1 = [params_ref[b1_off + j] for j in range(H)]
    w2 = [[params_ref[w2_off + i * O + j] for i in range(H)] for j in range(O)]
    b2 = [params_ref[b2_off + j] for j in range(O)]

    # fc1 + sigmoid: unrolled FMA chain on dense (tile_rows, 128) vregs.
    # Bias is folded into the first FMA (no jnp.full broadcast).
    h = []
    for j in range(H):
        acc = w1[j][0] * x_ref[0] + b1[j]
        for i in range(1, D):
            acc = acc + w1[j][i] * x_ref[i]
        h.append(_sigmoid(acc))                       # (tile_rows, 128)

    # fc2 + sigmoid; dense unmasked store per output row.
    for j in range(O):
        acc = w2[j][0] * h[0] + b2[j]
        for i in range(1, H):
            acc = acc + w2[j][i] * h[i]
        o_ref[j] = _sigmoid(acc)


def _choose_tiling(batch, *, max_tile_rows=4096, split_threshold_rows=64):
    """Pick (total_rows, tile_rows, n_tiles) for the (D, R, 128) layout."""
    rows_needed = pl.cdiv(batch, _LANES)
    rows = pl.cdiv(rows_needed, _SUBLANES) * _SUBLANES          # multiple of 8
    n_tiles = pl.cdiv(rows, max_tile_rows)
    # On v7x, keep >=2 tiles for large populations so both TensorCores get work;
    # for tiny batches the cross-core split overhead exceeds the work.
    if rows >= split_threshold_rows and n_tiles < 2:
        n_tiles = 2
    tile_rows = pl.cdiv(pl.cdiv(rows, n_tiles), _SUBLANES) * _SUBLANES
    rows = tile_rows * n_tiles
    return rows, tile_rows, n_tiles


def net_forward(x, w1, b1, w2, b2):
    """Forward pass of the GeneticAi Net.

    x:  (B, input_dim) float32                    -- same layout as the PyTorch module
    w1: (hidden, input_dim), b1: (hidden,)        -- fc1.weight / fc1.bias (PyTorch layout)
    w2: (output_dim, hidden), b2: (output_dim,)   -- fc2.weight / fc2.bias (PyTorch layout)
    returns: (B, output_dim) float32
    """
    B, D = x.shape
    H = w1.shape[0]
    O = w2.shape[0]

    # Pack all parameters (9 scalars for D=4,H=2,O=1) into one flat SMEM vector:
    # w1 as (D, H) row-major | b1 | w2 as (H, O) row-major | b2.
    params = jnp.concatenate(
        [w1.T.reshape(-1), b1.reshape(-1), w2.T.reshape(-1), b2.reshape(-1)]
    ).astype(jnp.float32)

    rows, tile_rows, n_tiles = _choose_tiling(B)
    Bp = rows * _LANES

    # Feature-major, padded, then folded onto (sublane, lane): (D, rows, 128).
    # TODO(synk): callers that already keep the GA population feature-major can
    # feed (D, rows, 128) directly and skip this transpose/pad HBM pass.
    xt = x.T.astype(jnp.float32)                                 # (D, B)
    if Bp != B:
        xt = jnp.pad(xt, ((0, 0), (0, Bp - B)))
    xr = xt.reshape(D, rows, _LANES)

    cost = pl.CostEstimate(
        flops=2 * Bp * (D * H + H * O) + Bp * (H + O),
        transcendentals=Bp * (H + O),
        bytes_accessed=xr.size * 4 + Bp * O * 4 + params.size * 4,
    )

    out = pl.pallas_call(
        partial(_net_kernel, input_dim=D, hidden=H, output_dim=O),
        out_shape=jax.ShapeDtypeStruct((O, rows, _LANES), jnp.float32),
        grid=(n_tiles,),
        in_specs=[
            # 9 scalars: SMEM, no VMEM tiles / double-buffered DMAs for them.
            pl.BlockSpec(memory_space=pltpu.MemorySpace.SMEM),
            # x tile: full feature dim, batch dense on (sublane, lane).
            pl.BlockSpec((D, tile_rows, _LANES), lambda i: (0, i, 0)),
        ],
        out_specs=pl.BlockSpec((O, tile_rows, _LANES), lambda i: (0, i, 0)),
        compiler_params=pltpu.CompilerParams(
            dimension_semantics=("parallel",),   # v7x: shard tiles across its 2 TCs
        ),
        cost_estimate=cost,
    )(params, xr)

    return out.reshape(O, Bp)[:, :B].T                           # back to (B, output_dim)


def _reference(x, w1, b1, w2, b2):
    h = jax.nn.sigmoid(x @ w1.T + b1)
    return jax.nn.sigmoid(h @ w2.T + b2)


if __name__ == "__main__":
    key = jax.random.PRNGKey(0)
    k_x, k_w1, k_b1, k_w2, k_b2, k_x2 = jax.random.split(key, 6)

    input_dim = 4    # flappy-bird feature vector
    hidden = 2       # fixed by the module definition
    output_dim = 1

    # PyTorch nn.Linear-style init (uniform +/- 1/sqrt(fan_in)), PyTorch layouts.
    lim1 = 1.0 / jnp.sqrt(jnp.float32(input_dim))
    w1 = jax.random.uniform(k_w1, (hidden, input_dim), jnp.float32, -lim1, lim1)
    b1 = jax.random.uniform(k_b1, (hidden,), jnp.float32, -lim1, lim1)

    lim2 = 1.0 / jnp.sqrt(jnp.float32(hidden))
    w2 = jax.random.uniform(k_w2, (output_dim, hidden), jnp.float32, -lim2, lim2)
    b2 = jax.random.uniform(k_b2, (output_dim,), jnp.float32, -lim2, lim2)

    # Small ragged batch (exercises the pad-to-(8,128) path, single-tile grid).
    batch = 96
    x = jax.random.normal(k_x, (batch, input_dim), dtype=jnp.float32)
    out = net_forward(x, w1, b1, w2, b2)
    jax.block_until_ready(out)
    ref = _reference(x, w1, b1, w2, b2)
    assert out.shape == (batch, output_dim)
    assert jnp.allclose(out, ref, atol=1e-5, rtol=1e-5)

    # Larger population (exercises the >=2-tile "parallel" grid path).
    batch2 = 8192
    x2 = jax.random.normal(k_x2, (batch2, input_dim), dtype=jnp.float32)
    out2 = net_forward(x2, w1, b1, w2, b2)
    jax.block_until_ready(out2)
    ref2 = _reference(x2, w1, b1, w2, b2)
    assert out2.shape == (batch2, output_dim)
    assert jnp.allclose(out2, ref2, atol=1e-5, rtol=1e-5)

    print("KERNEL_OK")
</pallas_src>

<mosaic_0001>
module attributes {stable_mosaic.version = 11 : i64} {
  func.func @_net_kernel(%arg0: i32, %arg1: memref<13xf32, #tpu.memory_space<smem>>, %arg2: memref<4x8x128xf32, #tpu.memory_space<vmem>>, %arg3: memref<1x8x128xf32, #tpu.memory_space<vmem>>) attributes {dimension_semantics = [#tpu.dimension_semantics<parallel>], iteration_bounds = array<i64: 1>, scalar_prefetch = 0 : i64, scratch_operands = 0 : i64, tpu.core_type = #tpu.core_type<tc>, window_params = [{transform_indices = @transform_0, window_bounds = array<i64: 13>}, {transform_indices = @transform_1, window_bounds = array<i64: 4, 8, 128>}, {transform_indices = @transform_2, window_bounds = array<i64: 1, 8, 128>}]} {
    %c0 = arith.constant 0 : index
    %0 = memref.load %arg1[%c0] : memref<13xf32, #tpu.memory_space<smem>>
    %c2 = arith.constant 2 : index
    %1 = memref.load %arg1[%c2] : memref<13xf32, #tpu.memory_space<smem>>
    %c4 = arith.constant 4 : index
    %2 = memref.load %arg1[%c4] : memref<13xf32, #tpu.memory_space<smem>>
    %c6 = arith.constant 6 : index
    %3 = memref.load %arg1[%c6] : memref<13xf32, #tpu.memory_space<smem>>
    %c1 = arith.constant 1 : index
    %4 = memref.load %arg1[%c1] : memref<13xf32, #tpu.memory_space<smem>>
    %c3 = arith.constant 3 : index
    %5 = memref.load %arg1[%c3] : memref<13xf32, #tpu.memory_space<smem>>
    %c5 = arith.constant 5 : index
    %6 = memref.load %arg1[%c5] : memref<13xf32, #tpu.memory_space<smem>>
    %c7 = arith.constant 7 : index
    %7 = memref.load %arg1[%c7] : memref<13xf32, #tpu.memory_space<smem>>
    %c8 = arith.constant 8 : index
    %8 = memref.load %arg1[%c8] : memref<13xf32, #tpu.memory_space<smem>>
    %c9 = arith.constant 9 : index
    %9 = memref.load %arg1[%c9] : memref<13xf32, #tpu.memory_space<smem>>
    %c10 = arith.constant 10 : index
    %10 = memref.load %arg1[%c10] : memref<13xf32, #tpu.memory_space<smem>>
    %c11 = arith.constant 11 : index
    %11 = memref.load %arg1[%c11] : memref<13xf32, #tpu.memory_space<smem>>
    %c12 = arith.constant 12 : index
    %12 = memref.load %arg1[%c12] : memref<13xf32, #tpu.memory_space<smem>>
    %c0_0 = arith.constant 0 : index
    %c0_1 = arith.constant 0 : index
    %c0_2 = arith.constant 0 : index
    %13 = vector.load %arg2[%c0_0, %c0_1, %c0_2] : memref<4x8x128xf32, #tpu.memory_space<vmem>>, vector<1x8x128xf32>
    %14 = vector.shape_cast %13 : vector<1x8x128xf32> to vector<8x128xf32>
    %15 = vector.broadcast %0 : f32 to vector<8x128xf32>
    %16 = arith.mulf %15, %14 : vector<8x128xf32>
    %17 = vector.broadcast %8 : f32 to vector<8x128xf32>
    %18 = arith.addf %16, %17 : vector<8x128xf32>
    %c1_3 = arith.constant 1 : index
    %c0_4 = arith.constant 0 : index
    %c0_5 = arith.constant 0 : index
    %19 = vector.load %arg2[%c1_3, %c0_4, %c0_5] : memref<4x8x128xf32, #tpu.memory_space<vmem>>, vector<1x8x128xf32>
    %20 = vector.shape_cast %19 : vector<1x8x128xf32> to vector<8x128xf32>
    %21 = vector.broadcast %1 : f32 to vector<8x128xf32>
    %22 = arith.mulf %21, %20 : vector<8x128xf32>
    %23 = arith.addf %18, %22 : vector<8x128xf32>
    %c2_6 = arith.constant 2 : index
    %c0_7 = arith.constant 0 : index
    %c0_8 = arith.constant 0 : index
    %24 = vector.load %arg2[%c2_6, %c0_7, %c0_8] : memref<4x8x128xf32, #tpu.memory_space<vmem>>, vector<1x8x128xf32>
    %25 = vector.shape_cast %24 : vector<1x8x128xf32> to vector<8x128xf32>
    %26 = vector.broadcast %2 : f32 to vector<8x128xf32>
    %27 = arith.mulf %26, %25 : vector<8x128xf32>
    %28 = arith.addf %23, %27 : vector<8x128xf32>
    %c3_9 = arith.constant 3 : index
    %c0_10 = arith.constant 0 : index
    %c0_11 = arith.constant 0 : index
    %29 = vector.load %arg2[%c3_9, %c0_10, %c0_11] : memref<4x8x128xf32, #tpu.memory_space<vmem>>, vector<1x8x128xf32>
    %30 = vector.shape_cast %29 : vector<1x8x128xf32> to vector<8x128xf32>
    %31 = vector.broadcast %3 : f32 to vector<8x128xf32>
    %32 = arith.mulf %31, %30 : vector<8x128xf32>
    %33 = arith.addf %28, %32 : vector<8x128xf32>
    %cst = arith.constant 5.000000e-01 : f32
    %34 = vector.broadcast %cst : f32 to vector<8x128xf32>
    %35 = arith.mulf %34, %33 : vector<8x128xf32>
    %36 = math.tanh %35 : vector<8x128xf32>
    %cst_12 = arith.constant 5.000000e-01 : f32
    %37 = vector.broadcast %cst_12 : f32 to vector<8x128xf32>
    %38 = arith.mulf %37, %36 : vector<8x128xf32>
    %cst_13 = arith.constant 5.000000e-01 : f32
    %39 = vector.broadcast %cst_13 : f32 to vector<8x128xf32>
    %40 = arith.addf %38, %39 : vector<8x128xf32>
    %c0_14 = arith.constant 0 : index
    %c0_15 = arith.constant 0 : index
    %c0_16 = arith.constant 0 : index
    %41 = vector.load %arg2[%c0_14, %c0_15, %c0_16] : memref<4x8x128xf32, #tpu.memory_space<vmem>>, vector<1x8x128xf32>
    %42 = vector.shape_cast %41 : vector<1x8x128xf32> to vector<8x128xf32>
    %43 = vector.broadcast %4 : f32 to vector<8x128xf32>
    %44 = arith.mulf %43, %42 : vector<8x128xf32>
    %45 = vector.broadcast %9 : f32 to vector<8x128xf32>
    %46 = arith.addf %44, %45 : vector<8x128xf32>
    %c1_17 = arith.constant 1 : index
    %c0_18 = arith.constant 0 : index
    %c0_19 = arith.constant 0 : index
    %47 = vector.load %arg2[%c1_17, %c0_18, %c0_19] : memref<4x8x128xf32, #tpu.memory_space<vmem>>, vector<1x8x128xf32>
    %48 = vector.shape_cast %47 : vector<1x8x128xf32> to vector<8x128xf32>
    %49 = vector.broadcast %5 : f32 to vector<8x128xf32>
    %50 = arith.mulf %49, %48 : vector<8x128xf32>
    %51 = arith.addf %46, %50 : vector<8x128xf32>
    %c2_20 = arith.constant 2 : index
    %c0_21 = arith.constant 0 : index
    %c0_22 = arith.constant 0 : index
    %52 = vector.load %arg2[%c2_20, %c0_21, %c0_22] : memref<4x8x128xf32, #tpu.memory_space<vmem>>, vector<1x8x128xf32>
    %53 = vector.shape_cast %52 : vector<1x8x128xf32> to vector<8x128xf32>
    %54 = vector.broadcast %6 : f32 to vector<8x128xf32>
    %55 = arith.mulf %54, %53 : vector<8x128xf32>
    %56 = arith.addf %51, %55 : vector<8x128xf32>
    %c3_23 = arith.constant 3 : index
    %c0_24 = arith.constant 0 : index
    %c0_25 = arith.constant 0 : index
    %57 = vector.load %arg2[%c3_23, %c0_24, %c0_25] : memref<4x8x128xf32, #tpu.memory_space<vmem>>, vector<1x8x128xf32>
    %58 = vector.shape_cast %57 : vector<1x8x128xf32> to vector<8x128xf32>
    %59 = vector.broadcast %7 : f32 to vector<8x128xf32>
    %60 = arith.mulf %59, %58 : vector<8x128xf32>
    %61 = arith.addf %56, %60 : vector<8x128xf32>
    %cst_26 = arith.constant 5.000000e-01 : f32
    %62 = vector.broadcast %cst_26 : f32 to vector<8x128xf32>
    %63 = arith.mulf %62, %61 : vector<8x128xf32>
    %64 = math.tanh %63 : vector<8x128xf32>
    %cst_27 = arith.constant 5.000000e-01 : f32
    %65 = vector.broadcast %cst_27 : f32 to vector<8x128xf32>
    %66 = arith.mulf %65, %64 : vector<8x128xf32>
    %cst_28 = arith.constant 5.000000e-01 : f32
    %67 = vector.broadcast %cst_28 : f32 to vector<8x128xf32>
    %68 = arith.addf %66, %67 : vector<8x128xf32>
    %69 = vector.broadcast %10 : f32 to vector<8x128xf32>
    %70 = arith.mulf %69, %40 : vector<8x128xf32>
    %71 = vector.broadcast %12 : f32 to vector<8x128xf32>
    %72 = arith.addf %70, %71 : vector<8x128xf32>
    %73 = vector.broadcast %11 : f32 to vector<8x128xf32>
    %74 = arith.mulf %73, %68 : vector<8x128xf32>
    %75 = arith.addf %72, %74 : vector<8x128xf32>
    %cst_29 = arith.constant 5.000000e-01 : f32
    %76 = vector.broadcast %cst_29 : f32 to vector<8x128xf32>
    %77 = arith.mulf %76, %75 : vector<8x128xf32>
    %78 = math.tanh %77 : vector<8x128xf32>
    %cst_30 = arith.constant 5.000000e-01 : f32
    %79 = vector.broadcast %cst_30 : f32 to vector<8x128xf32>
    %80 = arith.mulf %79, %78 : vector<8x128xf32>
    %cst_31 = arith.constant 5.000000e-01 : f32
    %81 = vector.broadcast %cst_31 : f32 to vector<8x128xf32>
    %82 = arith.addf %80, %81 : vector<8x128xf32>
    %c0_32 = arith.constant 0 : index
    %c0_33 = arith.constant 0 : index
    %c0_34 = arith.constant 0 : index
    %83 = vector.load %arg3[%c0_32, %c0_33, %c0_34] : memref<1x8x128xf32, #tpu.memory_space<vmem>>, vector<1x8x128xf32>
    %84 = vector.shape_cast %83 : vector<1x8x128xf32> to vector<8x128xf32>
    %85 = vector.shape_cast %82 : vector<8x128xf32> to vector<1x8x128xf32>
    tpu.vector_store %arg3[%c0_32, %c0_33, %c0_34], %85 {strides = array<i32>} : memref<1x8x128xf32, #tpu.memory_space<vmem>>, vector<1x8x128xf32>,
    return
  }
  func.func @transform_0(%arg0: i32) -> i32 {
    %c0_i32 = arith.constant 0 : i32
    %c0_i32_0 = arith.constant 0 : i32
    return %c0_i32 : i32
  }
  func.func @transform_1(%arg0: i32) -> (i32, i32, i32) {
    %c0_i32 = arith.constant 0 : i32
    %c0_i32_0 = arith.constant 0 : i32
    %c0_i32_1 = arith.constant 0 : i32
    return %c0_i32, %arg0, %c0_i32_0 : i32, i32, i32
  }
  func.func @transform_2(%arg0: i32) -> (i32, i32, i32) {
    %c0_i32 = arith.constant 0 : i32
    %c0_i32_0 = arith.constant 0 : i32
    %c0_i32_1 = arith.constant 0 : i32
    return %c0_i32, %arg0, %c0_i32_0 : i32, i32, i32
  }
}

</mosaic_0001>

<bundles_post_ra>
// kernel: tpu_custom_call.1
= control target key start
LH: loop header
LB: loop body
LE: loop exit
PB: predicated region body
PF: predicated region fallthrough
CT: control target
= control target key end

     0   :  { %7 = vsyncpa [#allocation5], 0  ;;  %s243_s0 = inlined_call_operand.hbm [shape: f32[13], index: 0, kind: input, shape index: {}]   ;;  %s244_s1 = inlined_call_operand.hbm [shape: f32[4,8,128], index: 1, kind: input, shape index: {}]   ;;  %s245_s2 = inlined_call_operand.hbm [shape: f32[1,8,128], index: 2, kind: output, shape index: {}]  }
   0x1   :  { %8 = vsyncpa [#allocation3], 0 }
   0x2   :  { %9 = vsyncpa [#allocation4], 0  ;;  %s15_s11 = sshll.u32 %s243_s0, 4  ;;  %s23_s14 = sshll.u32 %s244_s1, 4  ;;  %s16_s11 = int_to_ptr.hbm [resolvable:$true] %s15_s11  ;;  %s24_s14 = int_to_ptr.hbm [resolvable:$true] %s23_s14 }
   0x3   :  { %s214_s15 = smov [#allocation2]   ;;  %s215_s16 = smov [#allocation6]  }
   0x4   :  { %18 = dma.hbm_to_smem %s16_s11, 16, %s214_s15, [#allocation5]  }
   0x5   :  { %s25_s17 = sshll.u32 %s215_s16, 4  ;;  %s216_s18 = smov 128   ;;  %s26_s17 = int_to_ptr.vmem [resolvable:$true] %s25_s17 }
   0x6   :  { %s217_s19 = smov 8  }
   0x7   :  { %31 = dma.hbm_to_vmem [thread:$0]  %s24_s14, 512, %s26_s17, [#allocation3], %s216_s18, %s216_s18, %s217_s19  }
   0x8   :  { %208 = dma.done.wait [#allocation5], 16  }
   0x9   :  { %209 = vsyncadd [#allocation5], 4294967280 }
   0xa   :  { %210 = dma.done.wait [#allocation3], 512  }
   0xb   :  { %211 = vsyncadd [#allocation3], 4294966784 }
   0xc   :  { %40 = sfence }
   0xd   :  { %s41_s0 = sld [smem:[#allocation2]]  ;;  %v54_v0 = vld [vmem:[#allocation6] sm:$0xff]  ;;  %v60_v2 = vld [vmem:[#allocation6 + $0x8] sm:$0xff]  ;;  %v65_v7 = vld [vmem:[#allocation6 + $0x10] sm:$0xff]  ;;  %s218_s3 = smov [#allocation7]  }
   0xe   :  { %s125_s20 = sld [smem:[#allocation2 + $0x2]]  ;;  %v70_v13 = vld [vmem:[#allocation6 + $0x18] sm:$0xff]  ;;  %s112_s4 = sshll.u32 %s218_s3, 4  ;;  %s113_s4 = int_to_ptr.vmem [resolvable:$true] %s112_s4 }
   0xf   :  { %s126_s21 = sld [smem:[#allocation2 + $0x4]]  ;;  %s114_s7 = sshll.u32 %s245_s2, 4  ;;  %s115_s7 = int_to_ptr.hbm [resolvable:$true] %s114_s7 }
  0x10   :  { %s127_s22 = sld [smem:[#allocation2 + $0x6]] }
  0x11   :  { %s128_s23 = sld [smem:[#allocation2 + $0x1]] }
  0x12   :  { %s129_s1 = sld [smem:[#allocation2 + $0x3]] }
  0x13   :  { %s130_s24 = sld [smem:[#allocation2 + $0x5]]  ;;  %v55_v1 = vstv %s41_s0 }
  0x14   :  { %s131_s25 = sld [smem:[#allocation2 + $0x7]]  ;;  %v61_v3 = vstv %s125_s20  ;;  %v56_v5 = vmul.f32 %v55_v1, %v54_v0 }
  0x15   :  { %s132_s26 = sld [smem:[#allocation2 + $0x8]]  ;;  %v66_v8 = vstv %s126_s21  ;;  %v62_v10 = vmul.f32 %v61_v3, %v60_v2 }
  0x16   :  { %s133_s27 = sld [smem:[#allocation2 + $0x9]]  ;;  %v71_v14 = vstv %s127_s22  ;;  %v67_v17 = vmul.f32 %v66_v8, %v65_v7 }
  0x17   :  { %v78_v4 = vstv %s128_s23  ;;  %v72_v23 = vmul.f32 %v71_v14, %v70_v13  ;;  %s134_s28 = sld [smem:[#allocation2 + $0xa]] }
  0x18   :  { %v82_v6 = vstv %s129_s1  ;;  %v79_v9 = vmul.f32 %v78_v4, %v54_v0  ;;  %s135_s29 = sld [smem:[#allocation2 + $0xb]] }
  0x19   :  { %v85_v11 = vstv %s130_s24  ;;  %v83_v15 = vmul.f32 %v82_v6, %v60_v2  ;;  %s136_s30 = sld [smem:[#allocation2 + $0xc]] }
  0x1a   :  { %v88_v19 = vstv %s131_s25  ;;  %v86_v21 = vmul.f32 %v85_v11, %v65_v7 }
  0x1b   :  { %v57_v12 = vstv %s132_s26  ;;  %v89_v25 = vmul.f32 %v88_v19, %v70_v13 }
  0x1c   :  { %v58_v16 = vadd.f32 %v57_v12, %v56_v5  ;;  %v80_v18 = vstv %s133_s27 }
  0x1d   :  { %v81_v20 = vadd.f32 %v80_v18, %v79_v9  ;;  %v95_v36 = vstv %s134_s28 }
  0x1e   :  { %v63_v22 = vadd.f32 %v62_v10, %v58_v16  ;;  %v99_v38 = vstv %s135_s29 }
  0x1f   :  { %v84_v24 = vadd.f32 %v83_v15, %v81_v20  ;;  %v97_v40 = vstv %s136_s30 }
  0x20   :  { %v68_v26 = vadd.f32 %v67_v17, %v63_v22 }
  0x21   :  { %v87_v27 = vadd.f32 %v86_v21, %v84_v24 }
  0x22   :  { %v73_v28 = vadd.f32 %v72_v23, %v68_v26 }
  0x23   :  { %v90_v29 = vadd.f32 %v89_v25, %v87_v27 }
  0x24   :  { %v74_v30 = vmul.f32 0.5, %v73_v28 }
  0x25   :  { %v91_v31 = vmul.f32 0.5, %v90_v29 }
  0x26   :  { %142 = vtanh.f32 %v74_v30 }
  0x27   :  { %144 = vtanh.f32 %v91_v31 }
  0x2c   :  { %v143_v32 = vpop.eup %142 }
  0x2d   :  { %v145_v33 = vpop.eup %144  ;;  %v76_v34 = vmul.f32 0.5, %v143_v32 }
  0x2e   :  { %v93_v35 = vmul.f32 0.5, %v145_v33 }
  0x2f   :  { %v77_v37 = vadd.f32 0.5, %v76_v34 }
  0x30   :  { %v94_v39 = vadd.f32 0.5, %v93_v35 }
  0x31   :  { %v96_v41 = vmul.f32 %v95_v36, %v77_v37 }
  0x32   :  { %v100_v42 = vmul.f32 %v99_v38, %v94_v39 }
  0x33   :  { %v98_v43 = vadd.f32 %v97_v40, %v96_v41 }
  0x35   :  { %v101_v44 = vadd.f32 %v100_v42, %v98_v43 }
  0x37   :  { %v102_v45 = vmul.f32 0.5, %v101_v44 }
  0x39   :  { %146 = vtanh.f32 %v102_v45 }
  0x3f   :  { %v147_v46 = vpop.eup %146 }
  0x40   :  { %v104_v47 = vmul.f32 0.5, %v147_v46 }
  0x42   :  { %v105_v48 = vadd.f32 0.5, %v104_v47 }
  0x44   :  { %106 = vst [vmem:[#allocation7] sm:$0xff] %v105_v48 }
  0x45   :  { %117 = dma.vmem_to_hbm [thread:$0]  %s113_s4, 128, %s115_s7, [#allocation4]  }
  0x46   :  { %212 = dma.done.wait [#allocation4], 128  }
  0x47   :  { %213 = vsyncadd [#allocation4], 4294967168 }
  0x48   :  { %122 = vsyncpa [#allocation3], 1 }
  0x49   :  { %123 = vsyncpa [#allocation4], 1 }
  0x4a   :  { %124 = vsyncpa [#allocation5], 1 }

</bundles_post_ra>
